<compile_context>
chip_gen: v7x
topology: tpu7x:2x2x1
jax: 0.10.0
libtpu: 0.0.40
codegen_flags: <defaults>
</compile_context>

<pallas_src>
import jax
import jax.numpy as jnp
from jax import lax
from jax.experimental import pallas as pl
from jax.experimental.pallas import tpu as pltpu


def _embed_kernel(idx_ref, w_ref, o_ref):
    # idx_ref: VMEM (TB, 1) int32   -- token ids for this tile
    # w_ref:   VMEM (V, E_pad)      -- full embedding table (constant block)
    # o_ref:   VMEM (TB, E_pad)     -- output tile
    tb = o_ref.shape[0]
    v = w_ref.shape[0]
    tok = idx_ref[...]                                    # (TB, 1)
    col = lax.broadcasted_iota(jnp.int32, (tb, v), 1)     # (TB, V)
    onehot = (col == tok).astype(w_ref.dtype)             # exact 0/1 values
    acc = jnp.dot(onehot, w_ref[...], preferred_element_type=jnp.float32)
    o_ref[...] = acc.astype(o_ref.dtype)


def const_embedding(indices, weight, *, token_block=512):
    """indices: (B, S) int; weight: (V, E) float -> (B, S, E) in weight dtype."""
    B, S = indices.shape
    V, E = weight.shape
    N = B * S
    itemsize = jnp.dtype(weight.dtype).itemsize

    # Lane-dense output: pad the embedding dim up to a multiple of 128.
    E_pad = ((E + 127) // 128) * 128
    if E_pad != E:
        weight = jnp.pad(weight, ((0, 0), (0, E_pad - E)))

    # Token block: multiple of the sublane packing granularity, no larger than
    # needed (avoids pad/slice work when it already divides B*S).
    sub = max(8, 32 // itemsize)          # 8 rows for f32, 16 for bf16
    tb = max(sub, min(token_block, N))
    tb = ((tb + sub - 1) // sub) * sub
    n_pad = pl.cdiv(N, tb) * tb

    flat_idx = indices.reshape(N).astype(jnp.int32)
    if n_pad != N:
        flat_idx = jnp.pad(flat_idx, (0, n_pad - N))      # pad tokens -> row 0
    idx_col = flat_idx.reshape(n_pad, 1)

    # Explicit VMEM budget: table + double-buffered output/index tiles.
    # TODO(synk): on v7x with a large vocab, drop the table's duplicate
    # pipeline buffer (pl.ANY + one-time copy into VMEM scratch).
    table_bytes = 2 * V * E_pad * itemsize
    out_bytes = 2 * tb * E_pad * itemsize
    idx_bytes = 2 * tb * 128 * 4          # (TB, 1) int32 tile, lane-padded
    need = table_bytes + out_bytes + idx_bytes
    vmem_limit = int(min(max(2 * need, 32 * 1024 * 1024), 64 * 1024 * 1024))

    out = pl.pallas_call(
        _embed_kernel,
        out_shape=jax.ShapeDtypeStruct((n_pad, E_pad), weight.dtype),
        grid=(n_pad // tb,),
        in_specs=[
            pl.BlockSpec((tb, 1), lambda i: (i, 0)),          # token ids
            pl.BlockSpec((V, E_pad), lambda i: (0, 0)),       # full table
        ],
        out_specs=pl.BlockSpec((tb, E_pad), lambda i: (i, 0)),
        compiler_params=pltpu.CompilerParams(
            dimension_semantics=("parallel",),                # tiles independent
            vmem_limit_bytes=vmem_limit,
        ),
    )(idx_col, weight)

    return out[:N, :E].reshape(B, S, E)


if __name__ == "__main__":
    key = jax.random.PRNGKey(0)
    k_w, k_idx = jax.random.split(key)

    vocab_size = 16
    embedding_size = 32
    B, S = 2, 8

    # Deterministic "pretrained" frozen embedding table.
    pretrained_embedding = jax.random.normal(
        k_w, (vocab_size, embedding_size), dtype=jnp.float32)
    indices = jax.random.randint(
        k_idx, (B, S), minval=0, maxval=vocab_size, dtype=jnp.int32)

    embed = jax.jit(const_embedding)
    out = embed(indices, pretrained_embedding)
    out = jax.block_until_ready(out)

    ref = pretrained_embedding[indices]
    assert out.shape == (B, S, embedding_size)
    assert out.dtype == jnp.float32
    assert jnp.allclose(out, ref, rtol=1e-5, atol=1e-6), "mismatch vs. reference gather"

    print("KERNEL_OK")
</pallas_src>

<mosaic_0001>
module attributes {stable_mosaic.version = 11 : i64} {
  func.func @_embed_kernel(%arg0: i32, %arg1: memref<16x1xi32, #tpu.memory_space<vmem>>, %arg2: memref<16x128xf32, #tpu.memory_space<vmem>>, %arg3: memref<16x128xf32, #tpu.memory_space<vmem>>) attributes {dimension_semantics = [#tpu.dimension_semantics<parallel>], iteration_bounds = array<i64: 1>, scalar_prefetch = 0 : i64, scratch_operands = 0 : i64, tpu.core_type = #tpu.core_type<tc>, window_params = [{transform_indices = @transform_0, window_bounds = array<i64: 16, 1>}, {pipeline_mode = #tpu.pipeline_mode<synchronous>, transform_indices = @transform_1, window_bounds = array<i64: 16, 128>}, {transform_indices = @transform_2, window_bounds = array<i64: 16, 128>}]} {
    %c0 = arith.constant 0 : index
    %c0_0 = arith.constant 0 : index
    %0 = vector.load %arg1[%c0, %c0_0] : memref<16x1xi32, #tpu.memory_space<vmem>>, vector<16x1xi32>
    %1 = tpu.iota {dimensions = array<i32: 1>} : vector<16x16xi32>
    %2 = vector.broadcast %0 : vector<16x1xi32> to vector<16x16xi32>
    %3 = arith.cmpi eq, %1, %2 : vector<16x16xi32>
    %4 = arith.extui %3 : vector<16x16xi1> to vector<16x16xi32>
    %5 = arith.sitofp %4 : vector<16x16xi32> to vector<16x16xf32>
    %c0_1 = arith.constant 0 : index
    %c0_2 = arith.constant 0 : index
    %6 = vector.load %arg2[%c0_1, %c0_2] : memref<16x128xf32, #tpu.memory_space<vmem>>, vector<16x128xf32>
    %cst = arith.constant dense<0.000000e+00> : vector<16x128xf32>
    %7 = tpu.matmul %5, %6, %cst {dimension_numbers = #tpu.dot_dimension_numbers<[1], [0], [0], [1], [0, 0, 1, 1], [], []>} : vector<16x16xf32>, vector<16x128xf32>, vector<16x128xf32> -> vector<16x128xf32>
    %c0_3 = arith.constant 0 : index
    %c0_4 = arith.constant 0 : index
    %8 = vector.load %arg3[%c0_3, %c0_4] : memref<16x128xf32, #tpu.memory_space<vmem>>, vector<16x128xf32>
    tpu.vector_store %arg3[%c0_3, %c0_4], %7 {strides = array<i32>} : memref<16x128xf32, #tpu.memory_space<vmem>>, vector<16x128xf32>,
    return
  }
  func.func @transform_0(%arg0: i32) -> (i32, i32) {
    %c0_i32 = arith.constant 0 : i32
    %c0_i32_0 = arith.constant 0 : i32
    return %arg0, %c0_i32 : i32, i32
  }
  func.func @transform_1(%arg0: i32) -> (i32, i32) {
    %c0_i32 = arith.constant 0 : i32
    %c0_i32_0 = arith.constant 0 : i32
    %c0_i32_1 = arith.constant 0 : i32
    return %c0_i32, %c0_i32_0 : i32, i32
  }
  func.func @transform_2(%arg0: i32) -> (i32, i32) {
    %c0_i32 = arith.constant 0 : i32
    %c0_i32_0 = arith.constant 0 : i32
    return %arg0, %c0_i32 : i32, i32
  }
}

</mosaic_0001>

<bundles_post_ra>
// kernel: const_embedding.1
= control target key start
LH: loop header
LB: loop body
LE: loop exit
PB: predicated region body
PF: predicated region fallthrough
CT: control target
= control target key end

     0   :  { %v139_v0 = vmov 0   ;;  %v13_v6 = vlaneseq  ;;  %vm29_vm0 = vcmask 130048   ;;  %v140_v9 = vmov 0.0   ;;  %s174_s0 = inlined_call_operand.vmem [shape: s32[16,1], index: 0, kind: input, shape index: {}]   ;;  %s175_s1 = inlined_call_operand.vmem [shape: f32[16,128], index: 1, kind: input, shape index: {}]   ;;  %s176_s2 = inlined_call_operand.vmem [shape: f32[16,128], index: 2, kind: output, shape index: {}]  }
   0x1   :  { %138 = vset.pattern.permute.xlu0 %v139_v0  ;;  %v11_v1 = vld [vmem:[%s174_s0] sm:$0xff]  ;;  %v28_v3 = vld [vmem:[%s175_s1 + $0x8] sm:$0xff] }
   0x2   :  { %v27_v2 = vld [vmem:[%s175_s1] sm:$0xff]  ;;  %16 = vperm.xlu0 %138, %v11_v1   ;;  %v12_v4 = vld [vmem:[%s174_s0 + $0x8] sm:$0xff]  ;;  %v14_v7 = vand.u32 127, %v13_v6 }
   0x3   :  { %v132_v5 = vpack.c.bf16 %v28_v3, %v27_v2 }
   0x5   :  { %133 = vmatprep.subr.bf16.mxu0 %v132_v5 }
   0x6   :  { %19 = vperm.xlu0 %138, %v12_v4   ;;  %135 = vmatpush3.bf16.msra.mxu0 %v132_v5 }
  0x81   :  { %v17_v8 = vpop.permute.xlu0 %16 }
  0x82   :  { %vm21_vm1 = vcmp.eq.s32.totalorder %v14_v7, %v17_v8 }
  0x83   :  { %v117_v10 = vsel %vm21_vm1, 1.0, %v140_v9 }
  0x84   :  { %129 = vmatprep.mubr.msk.f32.mxu0 %vm29_vm0, %v117_v10 }
  0x85   :  { %v20_v11 = vpop.permute.xlu0 %19 }
  0x86   :  { %vm22_vm2 = vcmp.eq.s32.totalorder %v14_v7, %v20_v11 }
  0x87   :  { %v118_v12 = vsel %vm22_vm2, 1.0, %v140_v9 }
  0x88   :  { %130 = vmatmul.mubr.msk.f32.vlgmr.msra.gmra.mrb[0].mxu0 %vm29_vm0, %v118_v12 }
 0x15b   :  { %v131_v13 = vpop.f32.mrb[0].mxu0 }
 0x15c   :  { %112 = vst [vmem:[%s176_s2 + $0x8] sm:$0xff] %v131_v13  ;;  %v102_v14 = vpop.f32.mrb[1].mxu0 }
 0x15d   :  { %111 = vst [vmem:[%s176_s2] sm:$0xff] %v102_v14 }

</bundles_post_ra>
